<compile_context>
chip_gen: v6e
topology: v6e:2x2x1
jax: 0.10.0
libtpu: 0.0.40
codegen_flags: <defaults>
</compile_context>

<pallas_src>
import jax
import jax.numpy as jnp
from jax import lax
from jax.experimental import pallas as pl
from jax.experimental.pallas import tpu as pltpu

# ---------------- configuration (synthetic, deterministic) ----------------
GRID_X, GRID_Y = 8, 8          # observation_space.high for SimpleGridStateEmbedder
N_CELLS = GRID_X * GRID_Y      # 64 distinct grid states
STATE_HIDDEN = 32              # hidden_size in SimpleGridStateEmbedder
STATE_FC = 256                 # fc_layer output in SimpleGridStateEmbedder
STATE_EMBED = 32               # state embedder embed_dim
ACTION_VOCAB = 4               # FixedVocabEmbedder vocab_size
ACTION_EMBED = 16              # action embedder embed_dim
REWARD_IN = 1                  # LinearEmbedder input_dim (scalar reward)
REWARD_EMBED = 8               # reward embedder embed_dim
TRANS_HIDDEN = 128             # nn.Linear(..., 128) in TransitionEmbedder
EMBED_DIM = 32                 # final transition embed_dim

BATCH = 256                    # demo batch (callers should aggregate >=128 rows)
BATCH_TILE = 128               # rows per grid step

# Weight-slab row layout (all sections 8-row aligned):
ROW_GS = 0                          # 64 rows: G_s table
ROW_GSN = N_CELLS                   # 64 rows: G_sn table
ROW_ACT = 2 * N_CELLS               # 8 rows: action table (4 valid, 4 zero-pad)
N_ACT_ROWS = 8
N_EMB_ROWS = ROW_ACT + N_ACT_ROWS   # 136 rows addressed by the multi-hot matmul
ROW_W2 = N_EMB_ROWS                 # 128 rows: w2 (lanes >= EMBED_DIM zero-padded)
N_SLAB_ROWS = ROW_W2 + TRANS_HIDDEN # 264 rows total

WEIGHT_DTYPE = jnp.float32  # jnp.bfloat16 halves weight DMA bytes (loosen tolerance)


# ---------------------------- Pallas kernel -------------------------------
def transition_kernel(idx_ref, r_ref, w_ref, v_ref, out_ref):
    """idx_ref : (tb, 5)  int32  [x_s, y_s, x_sn, y_sn, action]
       r_ref   : (tb, 1)  f32    raw rewards
       w_ref   : (264,128) weight slab  [G_s | G_sn | A_fold(pad) | w2(pad)]
       v_ref   : (8, 128) f32 vector slab  row0=w_r_fold row1=b1_fold row2=b2(pad)
       out_ref : (tb, EMBED_DIM) f32
    """
    f32 = jnp.float32
    tb = idx_ref.shape[0]
    wdt = w_ref.dtype

    idx = idx_ref[...]                                           # (tb, 5) int32
    cell_s = idx[:, 0:1] * GRID_Y + idx[:, 1:2]                  # rows [0, 64)
    cell_sn = idx[:, 2:3] * GRID_Y + idx[:, 3:4] + ROW_GSN       # rows [64, 128)
    act = idx[:, 4:5] + ROW_ACT                                  # rows [128, 132)

    # One multi-hot matmul replaces the three embedding gathers + layer-1 matmul.
    iota = lax.broadcasted_iota(jnp.int32, (tb, N_EMB_ROWS), 1)
    multi_hot = ((iota == cell_s) | (iota == cell_sn) | (iota == act)).astype(wdt)

    vecs = v_ref[...]                                            # (8, 128) f32
    w_r_fold = vecs[0:1, :]
    b1_fold = vecs[1:2, :]
    b2_pad = vecs[2:3, :]

    emb_tab = w_ref[0:N_EMB_ROWS, :]                             # (136, 128) static view
    h1 = (jnp.dot(multi_hot, emb_tab, preferred_element_type=f32)
          + r_ref[...] * w_r_fold                                # reward path: pure VPU
          + b1_fold)
    h1 = jnp.maximum(h1, 0.0)                                    # (tb, 128)

    w2_pad = w_ref[ROW_W2:ROW_W2 + TRANS_HIDDEN, :]              # (128, 128), lanes>=32 zero
    out = jnp.dot(h1.astype(wdt), w2_pad, preferred_element_type=f32) + b2_pad
    out_ref[...] = out[:, :EMBED_DIM]


# ------------------------------ wrapper ------------------------------------
def fold_params(p, weight_dtype=WEIGHT_DTYPE):
    """One-time exact algebraic folding into two contiguous slabs."""
    w_fc_x = p["w_fc"][:STATE_HIDDEN]
    w_fc_y = p["w_fc"][STATE_HIDDEN:]

    # Enumerate all 64 grid cells (cell = x * GRID_Y + y).
    xs = jnp.repeat(jnp.arange(GRID_X), GRID_Y)
    ys = jnp.tile(jnp.arange(GRID_Y), GRID_X)
    fc_cells = p["emb_x"][xs] @ w_fc_x + p["emb_y"][ys] @ w_fc_y + p["b_fc"]  # (64, 256)
    relu_fc = jnp.maximum(fc_cells, 0.0)

    G_s = relu_fc @ (p["w_ff"] @ p["w1_s"])                       # (64, 128)
    G_sn = relu_fc @ (p["w_ff"] @ p["w1_sn"])                     # (64, 128)
    A_fold = p["emb_a"] @ p["w1_a"]                               # (4, 128)
    A_pad = jnp.zeros((N_ACT_ROWS, TRANS_HIDDEN), jnp.float32).at[:ACTION_VOCAB].set(A_fold)
    w2_pad = jnp.zeros((TRANS_HIDDEN, TRANS_HIDDEN), jnp.float32).at[:, :EMBED_DIM].set(p["w2"])

    w_slab = jnp.concatenate([G_s, G_sn, A_pad, w2_pad], axis=0).astype(weight_dtype)

    w_r_fold = p["w_r"] @ p["w1_r"]                               # (1, 128)
    b1_fold = (p["b_ff"] @ (p["w1_s"] + p["w1_sn"])
               + p["b_r"] @ p["w1_r"] + p["b1"])                  # (1, 128)
    b2_pad = jnp.zeros((1, TRANS_HIDDEN), jnp.float32).at[:, :EMBED_DIM].set(p["b2"])
    v_slab = jnp.concatenate(
        [w_r_fold, b1_fold, b2_pad, jnp.zeros((5, TRANS_HIDDEN), jnp.float32)], axis=0)

    return {"w_slab": w_slab, "v_slab": v_slab}


@jax.jit
def transition_embedder_forward(fparams, obs, next_obs, actions, rewards):
    """Forward pass of TransitionEmbedder (single fused pallas_call).

    obs, next_obs: int32 (B, 2); actions: int32 (B,); rewards: f32 (B, 1).
    Returns f32 (B, EMBED_DIM).
    """
    B = obs.shape[0]
    idx = jnp.concatenate(
        [obs.astype(jnp.int32), next_obs.astype(jnp.int32),
         actions.reshape(B, 1).astype(jnp.int32)], axis=1)        # (B, 5)
    r = rewards.astype(jnp.float32).reshape(B, REWARD_IN)

    # Batch tiling: tile = 128 rows (or the 8-rounded batch if smaller).
    bp8 = ((B + 7) // 8) * 8
    tb = BATCH_TILE if bp8 >= BATCH_TILE else bp8
    bp = ((B + tb - 1) // tb) * tb
    if bp != B:
        idx = jnp.pad(idx, ((0, bp - B), (0, 0)))
        r = jnp.pad(r, ((0, bp - B), (0, 0)))

    out = pl.pallas_call(
        transition_kernel,
        out_shape=jax.ShapeDtypeStruct((bp, EMBED_DIM), jnp.float32),
        grid=(bp // tb,),
        in_specs=[
            pl.BlockSpec((tb, 5), lambda i: (i, 0)),
            pl.BlockSpec((tb, REWARD_IN), lambda i: (i, 0)),
            # Constant index maps: weight slabs DMA'd once, VMEM-resident across steps.
            pl.BlockSpec((N_SLAB_ROWS, TRANS_HIDDEN), lambda i: (0, 0)),
            pl.BlockSpec((8, TRANS_HIDDEN), lambda i: (0, 0)),
        ],
        out_specs=pl.BlockSpec((tb, EMBED_DIM), lambda i: (i, 0)),
        compiler_params=pltpu.CompilerParams(dimension_semantics=("parallel",)),
    )(idx, r, fparams["w_slab"], fparams["v_slab"])
    return out[:B]


# --------------------------- parameter init --------------------------------
def init_params(key):
    ks = jax.random.split(key, 16)
    scale = 0.1

    def w(k, shape):
        return scale * jax.random.normal(k, shape, dtype=jnp.float32)

    return {
        # SimpleGridStateEmbedder (shared between state and next_state)
        "emb_x": w(ks[0], (GRID_X, STATE_HIDDEN)),
        "emb_y": w(ks[1], (GRID_Y, STATE_HIDDEN)),
        "w_fc": w(ks[2], (2 * STATE_HIDDEN, STATE_FC)),
        "b_fc": w(ks[3], (1, STATE_FC)),
        "w_ff": w(ks[4], (STATE_FC, STATE_EMBED)),
        "b_ff": w(ks[5], (1, STATE_EMBED)),
        # FixedVocabEmbedder for actions
        "emb_a": w(ks[6], (ACTION_VOCAB, ACTION_EMBED)),
        # LinearEmbedder for rewards (input_dim = 1)
        "w_r": w(ks[7], (REWARD_IN, REWARD_EMBED)),
        "b_r": w(ks[8], (1, REWARD_EMBED)),
        # TransitionEmbedder MLP: Linear(88,128) row-partitioned, ReLU, Linear(128,embed_dim)
        "w1_s": w(ks[9], (STATE_EMBED, TRANS_HIDDEN)),
        "w1_sn": w(ks[10], (STATE_EMBED, TRANS_HIDDEN)),
        "w1_a": w(ks[11], (ACTION_EMBED, TRANS_HIDDEN)),
        "w1_r": w(ks[12], (REWARD_EMBED, TRANS_HIDDEN)),
        "b1": w(ks[13], (1, TRANS_HIDDEN)),
        "w2": w(ks[14], (TRANS_HIDDEN, EMBED_DIM)),
        "b2": w(ks[15], (1, EMBED_DIM)),
    }


# ------------------------- plain-JAX reference ------------------------------
def reference_forward(params, obs, next_obs, actions, rewards):
    def grid_embed(o):
        cat = jnp.concatenate(
            [params["emb_x"][o[:, 0]], params["emb_y"][o[:, 1]]], axis=-1
        )
        h = jnp.maximum(cat @ params["w_fc"] + params["b_fc"], 0.0)
        return h @ params["w_ff"] + params["b_ff"]

    s_e = grid_embed(obs)
    sn_e = grid_embed(next_obs)
    a_e = params["emb_a"][actions]
    r_e = rewards @ params["w_r"] + params["b_r"]
    cat = jnp.concatenate([s_e, sn_e, a_e, r_e], axis=-1)  # (B, 88)
    w1 = jnp.concatenate(
        [params["w1_s"], params["w1_sn"], params["w1_a"], params["w1_r"]], axis=0
    )
    h = jnp.maximum(cat @ w1 + params["b1"], 0.0)
    return h @ params["w2"] + params["b2"]


# --------------------------------- main -------------------------------------
if __name__ == "__main__":
    key = jax.random.PRNGKey(0)
    kp, ko, kn, ka, kr = jax.random.split(key, 5)

    params = init_params(kp)
    fparams = fold_params(params)  # one-time weight prep (not on the hot path)

    obs = jax.random.randint(ko, (BATCH, 2), 0, min(GRID_X, GRID_Y), dtype=jnp.int32)
    next_obs = jax.random.randint(kn, (BATCH, 2), 0, min(GRID_X, GRID_Y), dtype=jnp.int32)
    actions = jax.random.randint(ka, (BATCH,), 0, ACTION_VOCAB, dtype=jnp.int32)
    rewards = jax.random.normal(kr, (BATCH, REWARD_IN), dtype=jnp.float32)

    out = transition_embedder_forward(fparams, obs, next_obs, actions, rewards)
    out = jax.block_until_ready(out)

    ref = reference_forward(params, obs, next_obs, actions, rewards)
    tol = 1e-4 if WEIGHT_DTYPE == jnp.float32 else 3e-2
    assert out.shape == (BATCH, EMBED_DIM), out.shape
    assert jnp.allclose(out, ref, atol=tol, rtol=tol), "mismatch vs reference"

    print("KERNEL_OK")
</pallas_src>

<mosaic_0001>
module attributes {stable_mosaic.version = 11 : i64} {
  func.func @transition_kernel(%arg0: i32, %arg1: memref<128x5xi32, #tpu.memory_space<vmem>>, %arg2: memref<128x1xf32, #tpu.memory_space<vmem>>, %arg3: memref<264x128xf32, #tpu.memory_space<vmem>>, %arg4: memref<8x128xf32, #tpu.memory_space<vmem>>, %arg5: memref<128x32xf32, #tpu.memory_space<vmem>>) attributes {dimension_semantics = [#tpu.dimension_semantics<parallel>], iteration_bounds = array<i64: 2>, scalar_prefetch = 0 : i64, scratch_operands = 0 : i64, tpu.core_type = #tpu.core_type<tc>, window_params = [{transform_indices = @transform_0, window_bounds = array<i64: 128, 5>}, {transform_indices = @transform_1, window_bounds = array<i64: 128, 1>}, {pipeline_mode = #tpu.pipeline_mode<synchronous>, transform_indices = @transform_2, window_bounds = array<i64: 264, 128>}, {pipeline_mode = #tpu.pipeline_mode<synchronous>, transform_indices = @transform_3, window_bounds = array<i64: 8, 128>}, {transform_indices = @transform_4, window_bounds = array<i64: 128, 32>}]} {
    %c0 = arith.constant 0 : index
    %c0_0 = arith.constant 0 : index
    %0 = vector.load %arg1[%c0, %c0_0] : memref<128x5xi32, #tpu.memory_space<vmem>>, vector<128x5xi32>
    %1 = vector.extract_strided_slice %0 {offsets = [0, 0], sizes = [128, 1], strides = [1, 1]} : vector<128x5xi32> to vector<128x1xi32>
    %c8_i32 = arith.constant 8 : i32
    %2 = vector.broadcast %c8_i32 : i32 to vector<128x1xi32>
    %3 = arith.muli %1, %2 : vector<128x1xi32>
    %4 = vector.extract_strided_slice %0 {offsets = [0, 1], sizes = [128, 1], strides = [1, 1]} : vector<128x5xi32> to vector<128x1xi32>
    %5 = arith.addi %3, %4 : vector<128x1xi32>
    %6 = vector.extract_strided_slice %0 {offsets = [0, 2], sizes = [128, 1], strides = [1, 1]} : vector<128x5xi32> to vector<128x1xi32>
    %c8_i32_1 = arith.constant 8 : i32
    %7 = vector.broadcast %c8_i32_1 : i32 to vector<128x1xi32>
    %8 = arith.muli %6, %7 : vector<128x1xi32>
    %9 = vector.extract_strided_slice %0 {offsets = [0, 3], sizes = [128, 1], strides = [1, 1]} : vector<128x5xi32> to vector<128x1xi32>
    %10 = arith.addi %8, %9 : vector<128x1xi32>
    %c64_i32 = arith.constant 64 : i32
    %11 = vector.broadcast %c64_i32 : i32 to vector<128x1xi32>
    %12 = arith.addi %10, %11 : vector<128x1xi32>
    %13 = vector.extract_strided_slice %0 {offsets = [0, 4], sizes = [128, 1], strides = [1, 1]} : vector<128x5xi32> to vector<128x1xi32>
    %c128_i32 = arith.constant 128 : i32
    %14 = vector.broadcast %c128_i32 : i32 to vector<128x1xi32>
    %15 = arith.addi %13, %14 : vector<128x1xi32>
    %16 = tpu.iota {dimensions = array<i32: 1>} : vector<128x136xi32>
    %17 = vector.broadcast %5 : vector<128x1xi32> to vector<128x136xi32>
    %18 = arith.cmpi eq, %16, %17 : vector<128x136xi32>
    %19 = vector.broadcast %12 : vector<128x1xi32> to vector<128x136xi32>
    %20 = arith.cmpi eq, %16, %19 : vector<128x136xi32>
    %21 = arith.ori %18, %20 : vector<128x136xi1>
    %22 = vector.broadcast %15 : vector<128x1xi32> to vector<128x136xi32>
    %23 = arith.cmpi eq, %16, %22 : vector<128x136xi32>
    %24 = arith.ori %21, %23 : vector<128x136xi1>
    %25 = arith.extui %24 : vector<128x136xi1> to vector<128x136xi32>
    %26 = arith.sitofp %25 : vector<128x136xi32> to vector<128x136xf32>
    %c0_2 = arith.constant 0 : index
    %c0_3 = arith.constant 0 : index
    %27 = vector.load %arg4[%c0_2, %c0_3] : memref<8x128xf32, #tpu.memory_space<vmem>>, vector<8x128xf32>
    %28 = vector.extract_strided_slice %27 {offsets = [0, 0], sizes = [1, 128], strides = [1, 1]} : vector<8x128xf32> to vector<1x128xf32>
    %29 = vector.extract_strided_slice %27 {offsets = [1, 0], sizes = [1, 128], strides = [1, 1]} : vector<8x128xf32> to vector<1x128xf32>
    %30 = vector.extract_strided_slice %27 {offsets = [2, 0], sizes = [1, 128], strides = [1, 1]} : vector<8x128xf32> to vector<1x128xf32>
    %c0_4 = arith.constant 0 : index
    %c0_5 = arith.constant 0 : index
    %31 = vector.load %arg3[%c0_4, %c0_5] : memref<264x128xf32, #tpu.memory_space<vmem>>, vector<136x128xf32>
    %cst = arith.constant dense<0.000000e+00> : vector<128x128xf32>
    %32 = tpu.matmul %26, %31, %cst {dimension_numbers = #tpu.dot_dimension_numbers<[1], [0], [0], [1], [0, 0, 1, 1], [], []>} : vector<128x136xf32>, vector<136x128xf32>, vector<128x128xf32> -> vector<128x128xf32>
    %c0_6 = arith.constant 0 : index
    %c0_7 = arith.constant 0 : index
    %33 = vector.load %arg2[%c0_6, %c0_7] : memref<128x1xf32, #tpu.memory_space<vmem>>, vector<128x1xf32>
    %34 = vector.broadcast %33 : vector<128x1xf32> to vector<128x128xf32>
    %35 = vector.broadcast %28 : vector<1x128xf32> to vector<128x128xf32>
    %36 = arith.mulf %34, %35 : vector<128x128xf32>
    %37 = arith.addf %32, %36 : vector<128x128xf32>
    %38 = vector.broadcast %29 : vector<1x128xf32> to vector<128x128xf32>
    %39 = arith.addf %37, %38 : vector<128x128xf32>
    %cst_8 = arith.constant 0.000000e+00 : f32
    %40 = vector.broadcast %cst_8 : f32 to vector<128x128xf32>
    %41 = arith.maximumf %39, %40 : vector<128x128xf32>
    %c136 = arith.constant 136 : index
    %c0_9 = arith.constant 0 : index
    %42 = vector.load %arg3[%c136, %c0_9] : memref<264x128xf32, #tpu.memory_space<vmem>>, vector<128x128xf32>
    %cst_10 = arith.constant dense<0.000000e+00> : vector<128x128xf32>
    %43 = tpu.matmul %41, %42, %cst_10 {dimension_numbers = #tpu.dot_dimension_numbers<[1], [0], [0], [1], [0, 0, 1, 1], [], []>} : vector<128x128xf32>, vector<128x128xf32>, vector<128x128xf32> -> vector<128x128xf32>
    %44 = vector.broadcast %30 : vector<1x128xf32> to vector<128x128xf32>
    %45 = arith.addf %43, %44 : vector<128x128xf32>
    %46 = vector.extract_strided_slice %45 {offsets = [0, 0], sizes = [128, 32], strides = [1, 1]} : vector<128x128xf32> to vector<128x32xf32>
    %c0_11 = arith.constant 0 : index
    %c0_12 = arith.constant 0 : index
    %47 = vector.load %arg5[%c0_11, %c0_12] : memref<128x32xf32, #tpu.memory_space<vmem>>, vector<128x32xf32>
    tpu.vector_store %arg5[%c0_11, %c0_12], %46 {strides = array<i32>} : memref<128x32xf32, #tpu.memory_space<vmem>>, vector<128x32xf32>,
    return
  }
  func.func @transform_0(%arg0: i32) -> (i32, i32) {
    %c0_i32 = arith.constant 0 : i32
    %c0_i32_0 = arith.constant 0 : i32
    return %arg0, %c0_i32 : i32, i32
  }
  func.func @transform_1(%arg0: i32) -> (i32, i32) {
    %c0_i32 = arith.constant 0 : i32
    %c0_i32_0 = arith.constant 0 : i32
    return %arg0, %c0_i32 : i32, i32
  }
  func.func @transform_2(%arg0: i32) -> (i32, i32) {
    %c0_i32 = arith.constant 0 : i32
    %c0_i32_0 = arith.constant 0 : i32
    %c0_i32_1 = arith.constant 0 : i32
    return %c0_i32, %c0_i32_0 : i32, i32
  }
  func.func @transform_3(%arg0: i32) -> (i32, i32) {
    %c0_i32 = arith.constant 0 : i32
    %c0_i32_0 = arith.constant 0 : i32
    %c0_i32_1 = arith.constant 0 : i32
    return %c0_i32, %c0_i32_0 : i32, i32
  }
  func.func @transform_4(%arg0: i32) -> (i32, i32) {
    %c0_i32 = arith.constant 0 : i32
    %c0_i32_0 = arith.constant 0 : i32
    return %arg0, %c0_i32 : i32, i32
  }
}

</mosaic_0001>

<bundles_post_ra>
// kernel: transition_embedder_forward.1
= control target key start
LH: loop header
LB: loop body
LE: loop exit
PB: predicated region body
PF: predicated region fallthrough
CT: control target
= control target key end

     0   :  { %s1560_s15 = smov 0   ;;  %s2265_s0 = inlined_call_operand.vmem [shape: s32[256,5], index: 0, kind: input, shape index: {}]   ;;  %s2266_s1 = inlined_call_operand.vmem [shape: f32[256,1], index: 1, kind: input, shape index: {}]   ;;  %s2267_s2 = inlined_call_operand.vmem [shape: f32[264,128], index: 2, kind: input, shape index: {}]   ;;  %s2268_s3 = inlined_call_operand.vmem [shape: f32[8,128], index: 3, kind: input, shape index: {}]   ;;  %s2269_s4 = inlined_call_operand.vmem [shape: f32[256,32], index: 4, kind: output, shape index: {}]  }
   0x1 LB: > { %s1320_s16 = sadd.s32 4294967295, %s1527_s15   ;;  %p1324_p0 = scmp.ge.s32.totalorder %s1527_s15, 1  ;;  %s1527_s15 = sphi %s1560_s15, %s14_s15  }
   0x2   : > { %p174_p1 = scmp.lt.s32.totalorder %s1527_s15, 3 }
   0x4   : > { %p175_p2 = pnand %p1324_p0, %p174_p1 }
   0x5   : > { %s1325_s17 = sshll.u32 (!%p175_p2), %s1320_s16, 4  ;;  %s1530_s22 = smov (!%p175_p2), 127  }
   0x6   : > { %178 = sbr.rel (%p175_p2) target bundleno = 756 (0x2f4), region = 36  ;;  %p206_p3 = scmp.lt.s32.totalorder (!%p175_p2), %s1325_s17, 31 }
   0xb   : > { %v1529_v0 = vmov 4   ;;  %s2300_s17 = smov (!%p206_p3, %s1325_s17), 31  ;;  %v1531_v27 = vmov 0   ;;  %v722_v28 = vld [vmem:[%s2267_s2 + $0x78] sm:$0xff]  ;;  %v1532_v29 = vmov 0.0   ;;  %v721_v30 = vld [vmem:[%s2267_s2 + $0x70] sm:$0xff] }
   0xc   : > { %1499 = vset.pattern.permute.xlu1 %v1529_v0  ;;  %1500 = vset.pattern.permute.xlu0 %v1529_v0  ;;  %s1570_s18 = sshll.u32 %s2300_s17, 3  ;;  %v720_v33 = vld [vmem:[%s2267_s2 + $0x68] sm:$0xff]  ;;  %v719_v34 = vld [vmem:[%s2267_s2 + $0x60] sm:$0xff]  ;;  %v718_v41 = vld [vmem:[%s2267_s2 + $0x58] sm:$0xff]  ;;  %vm2270_vm8 = vcmask 64512  }
   0xd   : > { %s1576_s21 = scalar_lea.vmem %s2265_s0, %s1570_s18  ;;  %889 = vmatprep.subr.mxu0 %v1532_v29  ;;  %v717_v48 = vld [vmem:[%s2267_s2 + $0x50] sm:$0xff]  ;;  %v716_v49 = vld [vmem:[%s2267_s2 + $0x48] sm:$0xff]  ;;  %v715_v56 = vld [vmem:[%s2267_s2 + $0x40] sm:$0xff]  ;;  %s1794_s9 = scalar_lea.vmem %s2266_s1, %s1570_s18 }
   0xe   : > { %v1579_v1 = vld [vmem:[%s1576_s21 + $0x10] sm:$0xff]  ;;  %v1582_v2 = vld [vmem:[%s1576_s21] sm:$0xff]  ;;  %v1587_v3 = vld [vmem:[%s1576_s21 + $0x18] sm:$0xff]  ;;  %890 = vmatpush1.msra.mxu0 %v722_v28  ;;  %s2228_s24 = scalar_lea.vmem %s2269_s4, %s1570_s18 }
   0xf   : > { %259 = vrot.lane.b32.xlu1 %v1579_v1, %s1530_s22  ;;  %255 = vrot.lane.b32.xlu0 %v1582_v2, %s1530_s22  ;;  %v1590_v4 = vld [vmem:[%s1576_s21 + $0x8] sm:$0xff]  ;;  %v1598_v6 = vld [vmem:[%s1576_s21 + $0x20] sm:$0xff]  ;;  %v319_v17 = vadd.s32 128, %v1582_v2  ;;  %v322_v19 = vadd.s32 128, %v1587_v3  ;;  %v321_v20 = vadd.s32 128, %v1579_v1  ;;  %v241_v31 = vmul.u32 8, %v1579_v1 }
  0x10   : > { %v1595_v5 = vld [vmem:[%s1576_s21 + $0x28] sm:$0xff]  ;;  %v1603_v7 = vld [vmem:[%s1576_s21 + $0x38] sm:$0xff]  ;;  %v1606_v8 = vld [vmem:[%s1576_s21 + $0x30] sm:$0xff]  ;;  %v320_v18 = vadd.s32 128, %v1590_v4  ;;  %v323_v21 = vadd.s32 128, %v1598_v6  ;;  %891 = vmatprep.subr.mxu0 %v1532_v29  ;;  %v239_v32 = vmul.u32 8, %v1582_v2 }
  0x11   : > { %v1611_v9 = vld [vmem:[%s1576_s21 + $0x40] sm:$0xff]  ;;  %v1614_v10 = vld [vmem:[%s1576_s21 + $0x48] sm:$0xff]  ;;  %v1619_v11 = vld [vmem:[%s1576_s21 + $0x50] sm:$0xff]  ;;  %v325_v22 = vadd.s32 128, %v1606_v8  ;;  %v324_v23 = vadd.s32 128, %v1595_v5  ;;  %v326_v24 = vadd.s32 128, %v1603_v7  ;;  %892 = vmatpush1.msra.mxu0 %v721_v30 }
  0x12   : > { %v1622_v12 = vld [vmem:[%s1576_s21 + $0x58] sm:$0xff]  ;;  %v1627_v13 = vld [vmem:[%s1576_s21 + $0x60] sm:$0xff]  ;;  %v1630_v14 = vld [vmem:[%s1576_s21 + $0x68] sm:$0xff]  ;;  %v327_v25 = vadd.s32 128, %v1611_v9  ;;  %v328_v26 = vadd.s32 128, %v1614_v10  ;;  %893 = vmatprep.subr.mxu0 %v1532_v29  ;;  %v242_v39 = vmul.u32 8, %v1587_v3 }
  0x13   : > { %261 = vrot.lane.b32.xlu1 %v1587_v3, %s1530_s22  ;;  %257 = vrot.lane.b32.xlu0 %v1590_v4, %s1530_s22  ;;  %v1635_v15 = vld [vmem:[%s1576_s21 + $0x70] sm:$0xff]  ;;  %v1638_v16 = vld [vmem:[%s1576_s21 + $0x78] sm:$0xff]  ;;  %v240_v40 = vmul.u32 8, %v1590_v4  ;;  %v244_v46 = vmul.u32 8, %v1595_v5 }
  0x14   : > { %894 = vmatpush1.msra.mxu0 %v720_v33  ;;  %v243_v47 = vmul.u32 8, %v1598_v6  ;;  %v246_v54 = vmul.u32 8, %v1603_v7  ;;  %v714_v62 = vld [vmem:[%s2267_s2 + $0x38] sm:$0xff]  ;;  %v713_v1 = vld [vmem:[%s2267_s2 + $0x30] sm:$0xff]  ;;  %v707_v28 = vld [vmem:[%s2267_s2] sm:$0xff]  ;;  %v330_v33 = vadd.s32 128, %v1622_v12 }
  0x15   : > { %895 = vmatprep.subr.mxu0 %v1532_v29  ;;  %v245_v55 = vmul.u32 8, %v1606_v8  ;;  %v247_v61 = vmul.u32 8, %v1611_v9  ;;  %v723_v30 = vld [vmem:[%s2267_s2 + $0x80] sm:$0xff] }
  0x16   : > { %896 = vmatpush1.msra.mxu0 %v719_v34  ;;  %v248_v63 = vmul.u32 8, %v1614_v10  ;;  %v329_v34 = vadd.s32 128, %v1619_v11 }
  0x17   : > { %265 = vrot.lane.b32.xlu1 %v1595_v5, %s1530_s22  ;;  %263 = vrot.lane.b32.xlu0 %v1598_v6, %s1530_s22  ;;  %v249_v5 = vmul.u32 8, %v1619_v11  ;;  %v712_v6 = vld [vmem:[%s2267_s2 + $0x28] sm:$0xff] }
  0x18   : > { %897 = vmatprep.subr.mxu0 %v1532_v29 }
  0x19   : > { %898 = vmatpush1.msra.mxu0 %v718_v41  ;;  %v331_v41 = vadd.s32 128, %v1627_v13 }
  0x1a   : > { %899 = vmatprep.subr.mxu0 %v1532_v29 }
  0x1b   : > { %269 = vrot.lane.b32.xlu1 %v1603_v7, %s1530_s22  ;;  %267 = vrot.lane.b32.xlu0 %v1606_v8, %s1530_s22  ;;  %v250_v8 = vmul.u32 8, %v1622_v12 }
  0x1c   : > { %900 = vmatpush1.msra.mxu0 %v717_v48 }
  0x1d   : > { %901 = vmatprep.subr.mxu0 %v1532_v29 }
  0x1e   : > { %902 = vmatpush1.msra.mxu0 %v716_v49 }
  0x1f   : > { %271 = vrot.lane.b32.xlu0 %v1611_v9, %s1530_s22  ;;  %273 = vrot.lane.b32.xlu1 %v1614_v10, %s1530_s22  ;;  %v711_v9 = vld [vmem:[%s2267_s2 + $0x20] sm:$0xff] }
  0x20   : > { %903 = vmatprep.subr.mxu0 %v1532_v29 }
  0x21   : > { %904 = vmatpush1.msra.mxu0 %v715_v56 }
  0x22   : > { %905 = vmatprep.subr.mxu0 %v1532_v29 }
  0x23   : > { %275 = vrot.lane.b32.xlu0 %v1619_v11, %s1530_s22  ;;  %277 = vrot.lane.b32.xlu1 %v1622_v12, %s1530_s22  ;;  %v252_v11 = vmul.u32 8, %v1630_v14 }
  0x24   : > { %906 = vmatpush1.msra.mxu0 %v714_v62  ;;  %v734_v62 = vld [vmem:[%s1794_s9 + $0x50] sm:$0xff] }
  0x25   : > { %907 = vmatprep.subr.mxu0 %v1532_v29 }
  0x26   : > { %908 = vmatpush1.msra.mxu0 %v713_v1 }
  0x27   : > { %279 = vrot.lane.b32.xlu0 %v1627_v13, %s1530_s22  ;;  %281 = vrot.lane.b32.xlu1 %v1630_v14, %s1530_s22 }
  0x28   : > { %909 = vmatprep.subr.mxu0 %v1532_v29 }
  0x29   : > { %910 = vmatpush1.msra.mxu0 %v712_v6  ;;  %v725_v6 = vld [vmem:[%s1794_s9 + $0x8] sm:$0xff] }
  0x2a   : > { %911 = vmatprep.subr.mxu0 %v1532_v29 }
  0x2b   : > { %283 = vrot.lane.b32.xlu0 %v1635_v15, %s1530_s22  ;;  %285 = vrot.lane.b32.xlu1 %v1638_v16, %s1530_s22 }
  0x2c   : > { %912 = vmatpush1.msra.mxu0 %v711_v9  ;;  %v727_v9 = vld [vmem:[%s1794_s9 + $0x18] sm:$0xff] }
  0x2d   : > { %913 = vmatprep.subr.mxu0 %v1532_v29 }
  0x2f   : > { %531 = vperm.xlu1 %1499, %v319_v17   ;;  %534 = vperm.xlu0 %1500, %v320_v18  }
  0x33   : > { %540 = vperm.xlu1 %1499, %v322_v19   ;;  %537 = vperm.xlu0 %1500, %v321_v20   ;;  %v710_v19 = vld [vmem:[%s2267_s2 + $0x18] sm:$0xff] }
  0x34   : > { %914 = vmatpush1.msra.mxu0 %v710_v19  ;;  %v1080_v19 = vld [vmem:[%s2267_s2 + $0xd8] sm:$0xff] }
  0x35   : > { %915 = vmatprep.subr.mxu0 %v1532_v29 }
  0x37   : > { %543 = vperm.xlu1 %1499, %v323_v21   ;;  %549 = vperm.xlu0 %1500, %v325_v22   ;;  %v709_v21 = vld [vmem:[%s2267_s2 + $0x10] sm:$0xff] }
  0x38   : > { %916 = vmatpush1.msra.mxu0 %v709_v21  ;;  %v1079_v21 = vld [vmem:[%s2267_s2 + $0xd0] sm:$0xff] }
  0x39   : > { %917 = vmatprep.subr.mxu0 %v1532_v29 }
  0x3b   : > { %546 = vperm.xlu1 %1499, %v324_v23   ;;  %552 = vperm.xlu0 %1500, %v326_v24   ;;  %v1533_v23 = vmov 2   ;;  %v708_v24 = vld [vmem:[%s2267_s2 + $0x8] sm:$0xff] }
  0x3c   : > { %918 = vmatpush1.msra.mxu0 %v708_v24  ;;  %v1078_v24 = vld [vmem:[%s2267_s2 + $0xc8] sm:$0xff] }
  0x3d   : > { %919 = vmatprep.subr.mxu0 %v1532_v29 }
  0x3e   : > { %920 = vmatpush1.msra.mxu0 %v707_v28  ;;  %v733_v28 = vld [vmem:[%s1794_s9 + $0x48] sm:$0xff] }
  0x3f   : > { %555 = vperm.xlu1 %1499, %v327_v25   ;;  %1501 = vset.pattern.permute.xlu0 %v1531_v27 }
  0x40   : > { %951 = vmatprep.subr.mxu0 %v1532_v29 }
  0x41   : > { %952 = vmatpush2.msra.mxu0 %v723_v30  ;;  %v1076_v30 = vld [vmem:[%s2267_s2 + $0xb8] sm:$0xff] }
  0x43   : > { %558 = vperm.xlu1 %1499, %v328_v26  }
  0x47   : > { %1502 = vset.pattern.permute.xlu1 %v1531_v27 }
  0x81   : > { %v260_v35 = vpop.permute.xlu1 %259  ;;  %v256_v36 = vpop.permute.xlu0 %255 }
  0x82   : > { %v1671_v37 = vadd.s32 %v260_v35, %v241_v31  ;;  %v1673_v38 = vadd.s32 %v256_v36, %v239_v32  ;;  %v251_v35 = vmul.u32 8, %v1627_v13  ;;  %v254_v13 = vmul.u32 8, %v1638_v16 }
  0x84   : > { %345 = vperm.xlu1 %1502, %v1671_v37   ;;  %339 = vperm.xlu0 %1501, %v1673_v38   ;;  %v303_v22 = vadd.s32 64, %v1673_v38  ;;  %v305_v31 = vadd.s32 64, %v1671_v37 }
  0x85   : > { %v262_v42 = vpop.permute.xlu1 %261  ;;  %v258_v43 = vpop.permute.xlu0 %257 }
  0x86   : > { %v1684_v44 = vadd.s32 %v262_v42, %v242_v39  ;;  %v1686_v45 = vadd.s32 %v258_v43, %v240_v40  ;;  %v253_v43 = vmul.u32 8, %v1635_v15 }
  0x88   : > { %348 = vperm.xlu1 %1502, %v1684_v44   ;;  %342 = vperm.xlu0 %1501, %v1686_v45   ;;  %v306_v25 = vadd.s32 64, %v1684_v44  ;;  %v304_v26 = vadd.s32 64, %v1686_v45 }
  0x89   : > { %v266_v50 = vpop.permute.xlu1 %265  ;;  %v264_v51 = vpop.permute.xlu0 %263 }
  0x8a   : > { %v1699_v52 = vadd.s32 %v266_v50, %v244_v46  ;;  %v1701_v53 = vadd.s32 %v264_v51, %v243_v47 }
  0x8c   : > { %351 = vperm.xlu1 %1502, %v1701_v53   ;;  %354 = vperm.xlu0 %1501, %v1699_v52   ;;  %v307_v32 = vadd.s32 64, %v1701_v53  ;;  %v308_v39 = vadd.s32 64, %v1699_v52  ;;  %v724_v53 = vld [vmem:[%s1794_s9] sm:$0xff] }
  0x8d   : > { %v270_v57 = vpop.permute.xlu1 %269  ;;  %v268_v58 = vpop.permute.xlu0 %267 }
  0x8e   : > { %v1712_v59 = vadd.s32 %v270_v57, %v246_v54  ;;  %v1714_v60 = vadd.s32 %v268_v58, %v245_v55  ;;  %v726_v55 = vld [vmem:[%s1794_s9 + $0x10] sm:$0xff]  ;;  %v728_v57 = vld [vmem:[%s1794_s9 + $0x20] sm:$0xff]  ;;  %v332_v58 = vadd.s32 128, %v1630_v14 }
  0x8f   : > { %v736_v14 = vld [vmem:[%s1794_s9 + $0x60] sm:$0xff] }
  0x90   : > { %360 = vperm.xlu1 %1502, %v1712_v59   ;;  %357 = vperm.xlu0 %1501, %v1714_v60   ;;  %v309_v44 = vadd.s32 64, %v1714_v60  ;;  %v310_v48 = vadd.s32 64, %v1712_v59  ;;  %v730_v59 = vld [vmem:[%s1794_s9 + $0x30] sm:$0xff]  ;;  %v732_v60 = vld [vmem:[%s1794_s9 + $0x40] sm:$0xff] }
  0x91   : > { %v272_v2 = vpop.permute.xlu0 %271  ;;  %v274_v3 = vpop.permute.xlu1 %273 }
  0x92   : > { %v295_v4 = vadd.s32 %v272_v2, %v247_v61  ;;  %v296_v7 = vadd.s32 %v274_v3, %v248_v63  ;;  %v333_v61 = vadd.s32 128, %v1635_v15  ;;  %v738_v3 = vld [vmem:[%s1794_s9 + $0x70] sm:$0xff]  ;;  %v334_v15 = vadd.s32 128, %v1638_v16 }
  0x94   : > { %363 = vperm.xlu1 %1502, %v295_v4   ;;  %v311_v38 = vadd.s32 64, %v295_v4  ;;  %v312_v12 = vadd.s32 64, %v296_v7 }
  0x95   : > { %v276_v10 = vpop.permute.xlu0 %275  ;;  %v278_v17 = vpop.permute.xlu1 %277 }
  0x96   : > { %v1737_v18 = vadd.s32 %v276_v10, %v249_v5  ;;  %v1744_v20 = vadd.s32 %v278_v17, %v250_v8  ;;  %v1084_v8 = vld [vmem:[%s2267_s2 + $0xf8] sm:$0xff]  ;;  %v1082_v10 = vld [vmem:[%s2267_s2 + $0xe8] sm:$0xff] }
  0x98   : > { %366 = vperm.xlu1 %1502, %v296_v7   ;;  %369 = vperm.xlu0 %1501, %v1737_v18   ;;  %v313_v52 = vadd.s32 64, %v1737_v18  ;;  %v314_v54 = vadd.s32 64, %v1744_v20  ;;  %v1085_v7 = vld [vmem:[%s2267_s2 + $0x100] sm:$0xff]  ;;  %v729_v18 = vld [vmem:[%s1794_s9 + $0x28] sm:$0xff] }
  0x99   : > { %v280_v36 = vpop.permute.xlu0 %279  ;;  %v282_v40 = vpop.permute.xlu1 %281  ;;  %1429 = vmatprep.subr.mxu1 %v1085_v7 }
  0x9a   : > { %v299_v37 = vadd.s32 %v280_v36, %v251_v35  ;;  %v300_v42 = vadd.s32 %v282_v40, %v252_v11  ;;  %1430 = vmatpush3.msra.mxu1 %v1085_v7  ;;  %v737_v36 = vld [vmem:[%s1794_s9 + $0x68] sm:$0xff] }
  0x9b   : > { %1431 = vmatprep.subr.mxu1 %v1084_v8 }
  0x9c   : > { %1503 = vset.pattern.permute.xlu1 %v1533_v23  ;;  %372 = vperm.xlu0 %1501, %v1744_v20   ;;  %v316_v46 = vadd.s32 64, %v300_v42  ;;  %v315_v56 = vadd.s32 64, %v299_v37 }
  0x9d   : > { %419 = vperm.xlu1 %1503, %v303_v22   ;;  %v284_v45 = vpop.permute.xlu0 %283  ;;  %v286_v50 = vpop.permute.xlu1 %285  ;;  %1432 = vmatpush3.msra.mxu1 %v1084_v8 }
  0x9e   : > { %v301_v47 = vadd.s32 %v284_v45, %v253_v43  ;;  %v302_v51 = vadd.s32 %v286_v50, %v254_v13 }
  0xa0   : > { %1505 = vset.pattern.permute.xlu0 %v1533_v23  ;;  %v317_v49 = vadd.s32 64, %v301_v47  ;;  %v318_v1 = vadd.s32 64, %v302_v51 }
  0xa1   : > { %428 = vperm.xlu0 %1505, %v306_v25   ;;  %422 = vperm.xlu1 %1503, %v304_v26   ;;  %v1077_v25 = vld [vmem:[%s2267_s2 + $0xc0] sm:$0xff] }
  0xa5   : > { %431 = vperm.xlu0 %1505, %v307_v32   ;;  %425 = vperm.xlu1 %1503, %v305_v31   ;;  %v1075_v32 = vld [vmem:[%s2267_s2 + $0xb0] sm:$0xff] }
  0xa9   : > { %1506 = vset.pattern.permute.xlu0 %v1529_v0  ;;  %1504 = vset.pattern.permute.xlu1 %v1529_v0 }
  0xaa   : > { %564 = vperm.xlu0 %1506, %v330_v33   ;;  %561 = vperm.xlu1 %1504, %v329_v34   ;;  %v1810_v63 = vpop.permute.xlu1 %531  ;;  %v1819_v4 = vpop.permute.xlu0 %534  ;;  %v735_v33 = vld [vmem:[%s1794_s9 + $0x58] sm:$0xff] }
  0xae   : > { %1509 = vset.pattern.permute.xlu0 %v1533_v23  ;;  %1507 = vset.pattern.permute.xlu1 %v1531_v27  ;;  %v1814_v2 = vpop.permute.xlu1 %540  ;;  %v1834_v16 = vpop.permute.xlu0 %537 }
  0xaf   : > { %443 = vperm.xlu0 %1509, %v311_v38   ;;  %375 = vperm.xlu1 %1507, %v299_v37  }
  0xb2   : > { %v1821_v5 = vpop.permute.xlu1 %543  ;;  %v1849_v20 = vpop.permute.xlu0 %549 }
  0xb3   : > { %446 = vperm.xlu0 %1509, %v312_v12   ;;  %1508 = vset.pattern.permute.xlu1 %v1533_v23  ;;  %v739_v12 = vld [vmem:[%s1794_s9 + $0x78] sm:$0xff] }
  0xb4   : > { %434 = vperm.xlu1 %1508, %v308_v39  }
  0xb6   : > { %v1840_v17 = vpop.permute.xlu1 %546  ;;  %v1863_v26 = vpop.permute.xlu0 %552 }
  0xb7   : > { %1510 = vset.pattern.permute.xlu0 %v1529_v0 }
  0xb8   : > { %567 = vperm.xlu0 %1510, %v331_v41   ;;  %437 = vperm.xlu1 %1508, %v309_v44   ;;  %v335_v41 = vlaneseq }
  0xba   : > { %v1854_v22 = vpop.permute.xlu1 %555  ;;  %v1892_v44 = vand.u32 127, %v335_v41 }
  0xbc   : > { %1513 = vset.pattern.permute.xlu0 %v1533_v23  ;;  %440 = vperm.xlu1 %1508, %v310_v48   ;;  %vm578_vm9 = vcmp.eq.s32.totalorder %v1892_v44, %v1810_v63 }
  0xbd   : > { %458 = vperm.xlu0 %1513, %v316_v46  }
  0xbe   : > { %v1869_v31 = vpop.permute.xlu1 %558 }
  0xc0   : > { %1511 = vset.pattern.permute.xlu1 %v1531_v27 }
  0xc1   : > { %461 = vperm.xlu0 %1513, %v317_v49   ;;  %378 = vperm.xlu1 %1511, %v300_v42  }
  0xc5   : > { %1517 = vset.pattern.permute.xlu0 %v1531_v27  ;;  %1512 = vset.pattern.permute.xlu1 %v1533_v23 }
  0xc6   : > { %384 = vperm.xlu0 %1517, %v302_v51   ;;  %449 = vperm.xlu1 %1512, %v313_v52   ;;  %v1534_v52 = vmov 1.0  }
  0xca   : > { %742 = vperm.xlu0 %1517, %v724_v53   ;;  %452 = vperm.xlu1 %1512, %v314_v54  }
  0xce   : > { %752 = vperm.xlu0 %1517, %v726_v55   ;;  %455 = vperm.xlu1 %1512, %v315_v56  }
  0xd2   : > { %762 = vperm.xlu0 %1517, %v728_v57   ;;  %1514 = vset.pattern.permute.xlu1 %v1529_v0 }
  0xd3   : > { %570 = vperm.xlu1 %1514, %v332_v58  }
  0xd6   : > { %772 = vperm.xlu0 %1517, %v730_v59  }
  0xd7   : > { %1515 = vset.pattern.permute.xlu1 %v1531_v27 }
  0xd8   : > { %381 = vperm.xlu1 %1515, %v301_v47   ;;  %v1899_v47 = vadd.s32 128, %v1892_v44 }
  0xda   : > { %782 = vperm.xlu0 %1517, %v732_v60   ;;  %vm579_vm5 = vcmp.eq.s32.totalorder %v1899_v47, %v1810_v63  ;;  %vm581_vm13 = vcmp.eq.s32.totalorder %v1899_v47, %v1819_v4 }
  0xdc   : > { %1516 = vset.pattern.permute.xlu1 %v1529_v0 }
  0xdd   : > { %573 = vperm.xlu1 %1516, %v333_v61  }
  0xde   : > { %792 = vperm.xlu0 %1517, %v734_v62  }
  0xe1   : > { %1518 = vset.pattern.permute.xlu1 %v1533_v23  ;;  %v731_v23 = vld [vmem:[%s1794_s9 + $0x38] sm:$0xff] }
  0xe2   : > { %802 = vperm.xlu0 %1517, %v736_v14   ;;  %464 = vperm.xlu1 %1518, %v318_v1  }
  0xe6   : > { %812 = vperm.xlu0 %1517, %v738_v3   ;;  %1519 = vset.pattern.permute.xlu1 %v1529_v0  ;;  %v1083_v0 = vld [vmem:[%s2267_s2 + $0xf0] sm:$0xff] }
  0xe7   : > { %576 = vperm.xlu1 %1519, %v334_v15   ;;  %1433 = vmatprep.subr.mxu1 %v1083_v0 }
  0xe8   : > { %1434 = vmatpush3.msra.mxu1 %v1083_v0 }
  0xe9   : > { %1435 = vmatprep.subr.mxu1 %v1082_v10 }
  0xea   : > { %1436 = vmatpush3.msra.mxu1 %v1082_v10 }
  0xeb   : > { %1520 = vset.pattern.permute.xlu1 %v1531_v27  ;;  %v1081_v27 = vld [vmem:[%s2267_s2 + $0xe0] sm:$0xff] }
  0xec   : > { %747 = vperm.xlu1 %1520, %v725_v6   ;;  %1437 = vmatprep.subr.mxu1 %v1081_v27  ;;  %v2279_v6 = vmov 0 }
  0xed   : > { %1438 = vmatpush3.msra.mxu1 %v1081_v27 }
  0xee   : > { %1439 = vmatprep.subr.mxu1 %v1080_v19 }
  0xef   : > { %1440 = vmatpush3.msra.mxu1 %v1080_v19 }
  0xf0   : > { %757 = vperm.xlu1 %1520, %v727_v9   ;;  %1441 = vmatprep.subr.mxu1 %v1079_v21 }
  0xf1   : > { %1442 = vmatpush3.msra.mxu1 %v1079_v21 }
  0xf2   : > { %1443 = vmatprep.subr.mxu1 %v1078_v24 }
  0xf3   : > { %1444 = vmatpush3.msra.mxu1 %v1078_v24 }
  0xf4   : > { %767 = vperm.xlu1 %1520, %v729_v18   ;;  %1445 = vmatprep.subr.mxu1 %v1077_v25 }
  0xf5   : > { %1446 = vmatpush3.msra.mxu1 %v1077_v25 }
  0xf6   : > { %1447 = vmatprep.subr.mxu1 %v1076_v30 }
  0xf7   : > { %1448 = vmatpush3.msra.mxu1 %v1076_v30 }
  0xf8   : > { %777 = vperm.xlu1 %1520, %v731_v23   ;;  %1449 = vmatprep.subr.mxu1 %v1075_v32 }
  0xf9   : > { %1450 = vmatpush3.msra.mxu1 %v1075_v32 }
  0xfc   : > { %787 = vperm.xlu1 %1520, %v733_v28  }
  0xff   : > { %v1875_v34 = vpop.permute.xlu1 %345  ;;  %v340_v35 = vpop.permute.xlu0 %339 }
 0x100   : > { %797 = vperm.xlu1 %1520, %v735_v33   ;;  %vm386_vm0 = vcmp.eq.s32.totalorder %v1892_v44, %v340_v35  ;;  %vm387_vm3 = vcmp.eq.s32.totalorder %v1899_v47, %v340_v35 }
 0x103   : > { %v1878_v37 = vpop.permute.xlu1 %348  ;;  %v343_v38 = vpop.permute.xlu0 %342 }
 0x104   : > { %807 = vperm.xlu1 %1520, %v737_v36   ;;  %vm389_vm12 = vcmp.eq.s32.totalorder %v1899_v47, %v343_v38 }
 0x107   : > { %v1881_v11 = vpop.permute.xlu1 %351  ;;  %v1883_v39 = vpop.permute.xlu0 %354 }
 0x108   : > { %817 = vperm.xlu1 %1520, %v739_v12  }
 0x10b   : > { %v1885_v40 = vpop.permute.xlu1 %360  ;;  %v1887_v42 = vpop.permute.xlu0 %357 }
 0x10f   : > { %v1889_v43 = vpop.permute.xlu1 %363 }
 0x113   : > { %v1894_v45 = vpop.permute.xlu1 %366  ;;  %v1896_v46 = vpop.permute.xlu0 %369 }
 0x117   : > { %v1901_v48 = vpop.permute.xlu0 %372 }
 0x118   : > { %v420_v49 = vpop.permute.xlu1 %419 }
 0x119   : > { %vm466_vm1 = vcmp.eq.s32.totalorder %v1892_v44, %v420_v49  ;;  %vm467_vm2 = vcmp.eq.s32.totalorder %v1899_v47, %v420_v49 }
 0x11a   : > { %vm498_vm4 = vmor %vm386_vm0, %vm466_vm1 }
 0x11b   : > { %vm499_vm6 = vmor %vm387_vm3, %vm467_vm2  ;;  %vm393_vm2 = vcmp.eq.s32.totalorder %v1899_v47, %v1878_v37 }
 0x11c   : > { %v423_v13 = vpop.permute.xlu1 %422  ;;  %vm611_vm7 = vmor %vm499_vm6, %vm579_vm5  ;;  %v429_v50 = vpop.permute.xlu0 %428  ;;  %vm391_vm6 = vcmp.eq.s32.totalorder %v1899_v47, %v1875_v34 }
 0x11d   : > { %v1332_v51 = vsel %vm611_vm7, 1.0, %v1532_v29  ;;  %vm469_vm10 = vcmp.eq.s32.totalorder %v1899_v47, %v423_v13  ;;  %vm610_vm11 = vmor %vm498_vm4, %vm578_vm9  ;;  %vm473_vm15 = vcmp.eq.s32.totalorder %v1899_v47, %v429_v50  ;;  %vm468_vm1 = vcmp.eq.s32.totalorder %v1892_v44, %v423_v13 }
 0x11e   : > { %1363 = vmatprep.mubr.msk.f32.mxu0 %vm2270_vm8, %v1332_v51  ;;  %vm501_vm14 = vmor %vm389_vm12, %vm469_vm10  ;;  %vm388_vm4 = vcmp.eq.s32.totalorder %v1892_v44, %v343_v38  ;;  %vm583_vm9 = vcmp.eq.s32.totalorder %v1899_v47, %v1834_v16  ;;  %vm580_vm12 = vcmp.eq.s32.totalorder %v1892_v44, %v1819_v4 }
 0x11f   : > { %1364 = vmatmul.mubr.msk.f32.vlgmr.msra.gmra.mxu0 %vm610_vm11, %v1534_v52  ;;  %vm613_vm0 = vmor %vm501_vm14, %vm581_vm13  ;;  %vm390_vm14 = vcmp.eq.s32.totalorder %v1892_v44, %v1875_v34 }
 0x120   : > { %v426_v53 = vpop.permute.xlu1 %425  ;;  %v432_v54 = vpop.permute.xlu0 %431  ;;  %v1334_v55 = vsel %vm613_vm0, 1.0, %v1532_v29  ;;  %vm1928_vm5 = vmor %vm393_vm2, %vm473_vm15 }
 0x121   : > { %vm471_vm3 = vcmp.eq.s32.totalorder %v1899_v47, %v426_v53  ;;  %1365 = vmatprep.mubr.msk.f32.mxu0 %vm2270_vm8, %v1334_v55  ;;  %vm500_vm7 = vmor %vm388_vm4, %vm468_vm1  ;;  %vm470_vm10 = vcmp.eq.s32.totalorder %v1892_v44, %v426_v53  ;;  %vm475_vm15 = vcmp.eq.s32.totalorder %v1899_v47, %v432_v54  ;;  %vm585_vm1 = vcmp.eq.s32.totalorder %v1899_v47, %v1814_v2 }
 0x122   : > { %vm503_vm11 = vmor %vm391_vm6, %vm471_vm3  ;;  %vm395_vm3 = vcmp.eq.s32.totalorder %v1899_v47, %v1881_v11  ;;  %vm472_vm4 = vcmp.eq.s32.totalorder %v1892_v44, %v429_v50 }
 0x123   : > { %vm615_vm13 = vmor %vm503_vm11, %vm583_vm9  ;;  %vm474_vm11 = vcmp.eq.s32.totalorder %v1892_v44, %v432_v54 }
 0x124   : > { %vm612_vm0 = vmor %vm500_vm7, %vm580_vm12  ;;  %v1336_v59 = vsel %vm615_vm13, 1.0, %v1532_v29  ;;  %vm582_vm7 = vcmp.eq.s32.totalorder %v1892_v44, %v1834_v16  ;;  %vm587_vm13 = vcmp.eq.s32.totalorder %v1899_v47, %v1821_v5 }
 0x125   : > { %v1925_v56 = vpop.permute.xlu1 %561  ;;  %v1934_v58 = vpop.permute.xlu0 %564  ;;  %vm502_vm2 = vmor %vm390_vm14, %vm470_vm10  ;;  %1366 = vmatmul.mubr.msk.f32.gmra.mxu0 %vm612_vm0, %v1534_v52  ;;  %vm392_vm10 = vcmp.eq.s32.totalorder %v1892_v44, %v1878_v37  ;;  %v1074_v37 = vld [vmem:[%s2267_s2 + $0xa8] sm:$0xff] }
 0x126   : > { %vm617_vm6 = vmor %vm1928_vm5, %vm585_vm1  ;;  %1367 = vmatprep.mubr.msk.f32.mxu0 %vm2270_vm8, %v1336_v59  ;;  %vm394_vm5 = vcmp.eq.s32.totalorder %v1892_v44, %v1881_v11  ;;  %vm584_vm1 = vcmp.eq.s32.totalorder %v1892_v44, %v1814_v2  ;;  %1451 = vmatprep.subr.mxu1 %v1074_v37  ;;  %v1073_v11 = vld [vmem:[%s2267_s2 + $0xa0] sm:$0xff] }
 0x127   : > { %vm507_vm9 = vmor %vm395_vm3, %vm475_vm15  ;;  %v1338_v62 = vsel %vm617_vm6, 1.0, %v1532_v29  ;;  %vm403_vm3 = vcmp.eq.s32.totalorder %v1899_v47, %v1889_v43  ;;  %vm586_vm6 = vcmp.eq.s32.totalorder %v1892_v44, %v1821_v5  ;;  %1452 = vmatpush3.msra.mxu1 %v1074_v37 }
 0x128   : > { %vm614_vm12 = vmor %vm502_vm2, %vm582_vm7  ;;  %1453 = vmatprep.subr.mxu1 %v1073_v11 }
 0x129   : > { %vm504_vm14 = vmor %vm392_vm10, %vm472_vm4  ;;  %1368 = vmatmul.mubr.msk.f32.gmra.mxu0 %vm614_vm12, %v1534_v52  ;;  %1454 = vmatpush3.msra.mxu1 %v1073_v11 }
 0x12a   : > { %v1945_v60 = vpop.permute.xlu1 %375  ;;  %v444_v61 = vpop.permute.xlu0 %443  ;;  %vm619_vm15 = vmor %vm507_vm9, %vm587_vm13  ;;  %1369 = vmatprep.mubr.msk.f32.mxu0 %vm2270_vm8, %v1338_v62  ;;  %vm397_vm9 = vcmp.eq.s32.totalorder %v1899_v47, %v1883_v39  ;;  %vm589_vm13 = vcmp.eq.s32.totalorder %v1899_v47, %v1840_v17 }
 0x12b   : > { %vm483_vm0 = vcmp.eq.s32.totalorder %v1899_v47, %v444_v61  ;;  %vm506_vm2 = vmor %vm394_vm5, %vm474_vm11  ;;  %v1340_v1 = vsel %vm619_vm15, 1.0, %v1532_v29  ;;  %vm595_vm15 = vcmp.eq.s32.totalorder %v1899_v47, %v1854_v22 }
 0x12c   : > { %vm616_vm4 = vmor %vm504_vm14, %vm584_vm1 }
 0x12d   : > { %vm1976_vm10 = vmor %vm403_vm3, %vm483_vm0  ;;  %1370 = vmatmul.mubr.msk.f32.gmra.mxu0 %vm616_vm4, %v1534_v52  ;;  %vm396_vm0 = vcmp.eq.s32.totalorder %v1892_v44, %v1883_v39  ;;  %vm399_vm3 = vcmp.eq.s32.totalorder %v1899_v47, %v1887_v42 }
 0x12e   : > { %1371 = vmatprep.mubr.msk.f32.mxu0 %vm2270_vm8, %v1340_v1  ;;  %vm618_vm11 = vmor %vm506_vm2, %vm586_vm6  ;;  %vm482_vm2 = vcmp.eq.s32.totalorder %v1892_v44, %v444_v61  ;;  %v447_v7 = vpop.permute.xlu0 %446 }
 0x12f   : > { %v435_v63 = vpop.permute.xlu1 %434  ;;  %vm2006_vm6 = vmor %vm1976_vm10, %vm595_vm15  ;;  %vm398_vm10 = vcmp.eq.s32.totalorder %v1892_v44, %v1887_v42  ;;  %vm401_vm15 = vcmp.eq.s32.totalorder %v1899_v47, %v1885_v40  ;;  %v1071_v42 = vld [vmem:[%s2267_s2 + $0x90] sm:$0xff] }
 0x130   : > { %vm477_vm7 = vcmp.eq.s32.totalorder %v1899_v47, %v435_v63  ;;  %vm476_vm12 = vcmp.eq.s32.totalorder %v1892_v44, %v435_v63  ;;  %v1348_v27 = vsel %vm2006_vm6, 1.0, %v1532_v29 }
 0x131   : > { %vm509_vm14 = vmor %vm397_vm9, %vm477_vm7  ;;  %1372 = vmatmul.mubr.msk.f32.gmra.mxu0 %vm618_vm11, %v1534_v52  ;;  %vm591_vm7 = vcmp.eq.s32.totalorder %v1899_v47, %v1849_v20  ;;  %vm588_vm11 = vcmp.eq.s32.totalorder %v1892_v44, %v1840_v17 }
 0x132   : > { %vm621_vm1 = vmor %vm509_vm14, %vm589_vm13 }
 0x133   : > { %v438_v3 = vpop.permute.xlu1 %437  ;;  %vm1997_vm4 = vmor %vm396_vm0, %vm476_vm12  ;;  %v1342_v15 = vsel %vm621_vm1, 1.0, %v1532_v29  ;;  %vm402_vm12 = vcmp.eq.s32.totalorder %v1892_v44, %v1889_v43  ;;  %v568_v19 = vpop.permute.xlu0 %567  ;;  %v2175_v43 = vshrl.u32 %v335_v41, 7 }
 0x134   : > { %vm479_vm5 = vcmp.eq.s32.totalorder %v1899_v47, %v438_v3  ;;  %vm478_vm9 = vcmp.eq.s32.totalorder %v1892_v44, %v438_v3  ;;  %1373 = vmatprep.mubr.msk.f32.mxu0 %vm2270_vm8, %v1342_v15  ;;  %vm2021_vm1 = vmor %vm402_vm12, %vm482_vm2 }
 0x135   : > { %vm511_vm13 = vmor %vm399_vm3, %vm479_vm5  ;;  %v2280_v6 = vsel %vm2021_vm1, 4294967295, %v2279_v6  ;;  %vm2281_vm1 = vcmask 64512  }
 0x136   : > { %vm623_vm14 = vmor %vm511_vm13, %vm591_vm7  ;;  %vm593_vm7 = vcmp.eq.s32.totalorder %v1899_v47, %v1863_v26 }
 0x137   : > { %v441_v4 = vpop.permute.xlu1 %440  ;;  %vm620_vm5 = vmor %vm1997_vm4, %vm588_vm11  ;;  %v1344_v8 = vsel %vm623_vm14, 1.0, %v1532_v29  ;;  %vm590_vm4 = vcmp.eq.s32.totalorder %v1892_v44, %v1849_v20  ;;  %vm485_vm11 = vcmp.eq.s32.totalorder %v1899_v47, %v447_v7  ;;  %vm484_vm14 = vcmp.eq.s32.totalorder %v1892_v44, %v447_v7 }
 0x138   : > { %vm481_vm0 = vcmp.eq.s32.totalorder %v1899_v47, %v441_v4  ;;  %vm510_vm3 = vmor %vm398_vm10, %vm478_vm9  ;;  %1374 = vmatmul.mubr.msk.f32.gmra.mxu0 %vm620_vm5, %v1534_v52  ;;  %vm480_vm2 = vcmp.eq.s32.totalorder %v1892_v44, %v441_v4  ;;  %vm400_vm9 = vcmp.eq.s32.totalorder %v1892_v44, %v1885_v40  ;;  %v459_v25 = vpop.permute.xlu0 %458  ;;  %v1072_v40 = vld [vmem:[%s2267_s2 + $0x98] sm:$0xff] }
 0x139   : > { %vm513_vm13 = vmor %vm401_vm15, %vm481_vm0  ;;  %1375 = vmatprep.mubr.msk.f32.mxu0 %vm2270_vm8, %v1344_v8  ;;  %vm405_vm0 = vcmp.eq.s32.totalorder %v1899_v47, %v1894_v45  ;;  %vm404_vm15 = vcmp.eq.s32.totalorder %v1892_v44, %v1894_v45  ;;  %1455 = vmatprep.subr.mxu1 %v1072_v40  ;;  %v2181_v45 = vld [vmem:[%s2268_s3] sm:$0xff] }
 0x13a   : > { %vm625_vm12 = vmor %vm513_vm13, %vm593_vm7  ;;  %vm592_vm7 = vcmp.eq.s32.totalorder %v1892_v44, %v1863_v26  ;;  %1456 = vmatpush3.msra.mxu1 %v1072_v40 }
 0x13b   : > { %vm622_vm10 = vmor %vm510_vm3, %vm590_vm4  ;;  %v1346_v16 = vsel %vm625_vm12, 1.0, %v1532_v29  ;;  %vm597_vm3 = vcmp.eq.s32.totalorder %v1899_v47, %v1869_v31  ;;  %vm407_vm12 = vcmp.eq.s32.totalorder %v1899_v47, %v1896_v46  ;;  %1457 = vmatprep.subr.mxu1 %v1071_v42 }
 0x13c   : > { %v2035_v0 = vpop.permute.xlu1 %378  ;;  %vm512_vm5 = vmor %vm400_vm9, %vm480_vm2  ;;  %1376 = vmatmul.mubr.msk.f32.gmra.mxu0 %vm622_vm10, %v1534_v52  ;;  %vm2286_vm9 = vcmask 64512   ;;  %v462_v33 = vpop.permute.xlu0 %461  ;;  %1458 = vmatpush3.msra.mxu1 %v1071_v42 }
 0x13d   : > { %vm517_vm8 = vmor %vm405_vm0, %vm485_vm11  ;;  %1377 = vmatprep.mubr.msk.f32.mxu0 %vm2281_vm1, %v1346_v16  ;;  %vm594_vm1 = vcmp.eq.s32.totalorder %v1892_v44, %v1854_v22  ;;  %vm2287_vm0 = vnez %v2280_v6 }
 0x13e   : > { %vm2052_vm13 = vmor %vm404_vm15, %vm484_vm14  ;;  %vm406_vm15 = vcmp.eq.s32.totalorder %v1892_v44, %v1896_v46 }
 0x13f   : > { %vm624_vm2 = vmor %vm512_vm5, %vm592_vm7 }
 0x140   : > { %vm2061_vm11 = vmor %vm517_vm8, %vm597_vm3  ;;  %1378 = vmatmul.mubr.msk.f32.gmra.mxu0 %vm624_vm2, %v1534_v52  ;;  %vm599_vm8 = vcmp.eq.s32.totalorder %v1899_v47, %v1925_v56  ;;  %vm409_vm3 = vcmp.eq.s32.totalorder %v1899_v47, %v1901_v48 }
 0x141   : > { %v450_v10 = vpop.permute.xlu1 %449  ;;  %1379 = vmatprep.mubr.msk.f32.mxu0 %vm2286_vm9, %v1348_v27  ;;  %vm626_vm5 = vmor %vm2287_vm0, %vm594_vm1  ;;  %v1350_v21 = vsel %vm2061_vm11, 1.0, %v1532_v29  ;;  %vm408_vm11 = vcmp.eq.s32.totalorder %v1892_v44, %v1901_v48  ;;  %v385_v38 = vpop.permute.xlu0 %384 }
 0x142   : > { %vm487_vm4 = vcmp.eq.s32.totalorder %v1899_v47, %v450_v10  ;;  %vm486_vm14 = vcmp.eq.s32.totalorder %v1892_v44, %v450_v10 }
 0x143   : > { %vm519_vm10 = vmor %vm407_vm12, %vm487_vm4  ;;  %vm596_vm4 = vcmp.eq.s32.totalorder %v1892_v44, %v1869_v31 }
 0x144   : > { %vm631_vm6 = vmor %vm519_vm10, %vm599_vm8  ;;  %1380 = vmatmul.mubr.msk.f32.gmra.mxu0 %vm626_vm5, %v1534_v52  ;;  %vm601_vm10 = vcmp.eq.s32.totalorder %v1899_v47, %v1934_v58  ;;  %vm411_vm5 = vcmp.eq.s32.totalorder %v1899_v47, %v1945_v60 }
 0x145   : > { %v453_v18 = vpop.permute.xlu1 %452  ;;  %vm2083_vm2 = vmor %vm406_vm15, %vm486_vm14  ;;  %v1352_v22 = vsel %vm631_vm6, 1.0, %v1532_v29  ;;  %vm603_vm15 = vcmp.eq.s32.totalorder %v1899_v47, %v568_v19  ;;  %v743_v48 = vpop.permute.xlu0 %742 }
 0x146   : > { %vm489_vm7 = vcmp.eq.s32.totalorder %v1899_v47, %v453_v18  ;;  %vm2290_vm12 = vmmov %vm2286_vm9  ;;  %vm488_vm1 = vcmp.eq.s32.totalorder %v1892_v44, %v453_v18 }
 0x147   : > { %1381 = vmatprep.mubr.msk.f32.mxu0 %vm2290_vm12, %v1350_v21  ;;  %vm521_vm9 = vmor %vm409_vm3, %vm489_vm7 }
 0x148   : > { %vm628_vm14 = vmor %vm2052_vm13, %vm596_vm4  ;;  %vm598_vm13 = vcmp.eq.s32.totalorder %v1892_v44, %v1925_v56  ;;  %vm493_vm4 = vcmp.eq.s32.totalorder %v1899_v47, %v459_v25 }
 0x149   : > { %v456_v23 = vpop.permute.xlu1 %455  ;;  %vm633_vm8 = vmor %vm521_vm9, %vm601_vm10  ;;  %1382 = vmatmul.mubr.msk.f32.gmra.mxu0 %vm628_vm14, %v1534_v52  ;;  %vm600_vm14 = vcmp.eq.s32.totalorder %v1892_v44, %v1934_v58  ;;  %v753_v57 = vpop.permute.xlu0 %752 }
 0x14a   : > { %vm491_vm0 = vcmp.eq.s32.totalorder %v1899_v47, %v456_v23  ;;  %vm2106_vm7 = vmor %vm408_vm11, %vm488_vm1  ;;  %v1354_v26 = vsel %vm633_vm8, 1.0, %v1532_v29 }
 0x14b   : > { %vm2293_vm6 = vmmov %vm2290_vm12  ;;  %vm413_vm12 = vcmp.eq.s32.totalorder %v1899_v47, %v2035_v0 }
 0x14c   : > { %1383 = vmatprep.mubr.msk.f32.mxu0 %vm2293_vm6, %v1352_v22  ;;  %vm523_vm3 = vmor %vm411_vm5, %vm491_vm0  ;;  %vm490_vm0 = vcmp.eq.s32.totalorder %v1892_v44, %v456_v23 }
 0x14d   : > { %vm630_vm9 = vmor %vm2083_vm2, %vm598_vm13  ;;  %vm410_vm2 = vcmp.eq.s32.totalorder %v1892_v44, %v1945_v60  ;;  %v763_v5 = vpop.permute.xlu0 %762 }
 0x14e   : > { %vm635_vm1 = vmor %vm523_vm3, %vm603_vm15  ;;  %v571_v28 = vpop.permute.xlu1 %570  ;;  %1384 = vmatmul.mubr.msk.f32.gmra.mxu0 %vm630_vm9, %v1534_v52  ;;  %vm602_vm15 = vcmp.eq.s32.totalorder %v1892_v44, %v568_v19 }
 0x14f   : > { %vm605_vm10 = vcmp.eq.s32.totalorder %v1899_v47, %v571_v28  ;;  %vm525_vm11 = vmor %vm413_vm12, %vm493_vm4  ;;  %v1356_v30 = vsel %vm635_vm1, 1.0, %v1532_v29  ;;  %vm492_vm4 = vcmp.eq.s32.totalorder %v1892_v44, %v459_v25  ;;  %vm412_vm12 = vcmp.eq.s32.totalorder %v1892_v44, %v2035_v0 }
 0x150   : > { %vm2294_vm5 = vmmov %vm2293_vm6  ;;  %vm495_vm1 = vcmp.eq.s32.totalorder %v1899_v47, %v462_v33 }
 0x151   : > { %1385 = vmatprep.mubr.msk.f32.mxu0 %vm2294_vm5, %v1354_v26  ;;  %vm632_vm6 = vmor %vm2106_vm7, %vm600_vm14  ;;  %vm604_vm7 = vcmp.eq.s32.totalorder %v1892_v44, %v571_v28  ;;  %v773_v24 = vpop.permute.xlu0 %772 }
 0x152   : > { %vm637_vm8 = vmor %vm525_vm11, %vm605_vm10  ;;  %1386 = vmatmul.mubr.msk.f32.gmra.mxu0 %vm632_vm6, %v1534_v52  ;;  %vm494_vm6 = vcmp.eq.s32.totalorder %v1892_v44, %v462_v33 }
 0x153   : > { %vm522_vm13 = vmor %vm410_vm2, %vm490_vm0  ;;  %v382_v31 = vpop.permute.xlu1 %381  ;;  %v1358_v32 = vsel %vm637_vm8, 1.0, %v1532_v29 }
 0x154   : > { %vm2295_vm3 = vmmov %vm2294_vm5  ;;  %vm415_vm10 = vcmp.eq.s32.totalorder %v1899_v47, %v382_v31  ;;  %vm414_vm2 = vcmp.eq.s32.totalorder %v1892_v44, %v382_v31 }
 0x155   : > { %1387 = vmatprep.mubr.msk.f32.mxu0 %vm2295_vm3, %v1356_v30  ;;  %vm634_vm9 = vmor %vm522_vm13, %vm602_vm15  ;;  %v783_v11 = vpop.permute.xlu0 %782 }
 0x156   : > { %1388 = vmatmul.mubr.msk.f32.gmra.mxu0 %vm634_vm9, %v1534_v52  ;;  %vm524_vm14 = vmor %vm412_vm12, %vm492_vm4  ;;  %vm417_vm9 = vcmp.eq.s32.totalorder %v1899_v47, %v385_v38 }
 0x157   : > { %vm2296_vm11 = vmmov %vm2295_vm3 }
 0x158   : > { %1389 = vmatprep.mubr.msk.f32.mxu0 %vm2296_vm11, %v1358_v32  ;;  %v574_v34 = vpop.permute.xlu1 %573  ;;  %vm636_vm0 = vmor %vm524_vm14, %vm604_vm7 }
 0x159   : > { %vm607_vm5 = vcmp.eq.s32.totalorder %v1899_v47, %v574_v34  ;;  %vm527_vm8 = vmor %vm415_vm10, %vm495_vm1  ;;  %vm606_vm15 = vcmp.eq.s32.totalorder %v1892_v44, %v574_v34 }
 0x15a   : > { %1390 = vmatmul.mubr.msk.f32.gmra.mxu0 %vm636_vm0, %v1534_v52  ;;  %vm639_vm13 = vmor %vm527_vm8, %vm607_vm5  ;;  %vm416_vm0 = vcmp.eq.s32.totalorder %v1892_v44, %v385_v38 }
 0x15b   : > { %v1360_v35 = vsel %vm639_vm13, 1.0, %v1532_v29  ;;  %vm526_vm3 = vmor %vm414_vm2, %vm494_vm6 }
 0x15c   : > { %vm2297_vm4 = vmmov %vm2296_vm11 }
 0x15d   : > { %1391 = vmatprep.mubr.msk.f32.mxu0 %vm2297_vm4, %v1360_v35  ;;  %v465_v36 = vpop.permute.xlu1 %464  ;;  %vm638_vm12 = vmor %vm526_vm3, %vm606_vm15  ;;  %vm1235_vm15 = vcmask 261120  }
 0x15e   : > { %1392 = vmatmul.mubr.msk.f32.gmra.mxu0 %vm638_vm12, %v1534_v52  ;;  %vm497_vm7 = vcmp.eq.s32.totalorder %v1899_v47, %v465_v36  ;;  %vm496_vm1 = vcmp.eq.s32.totalorder %v1892_v44, %v465_v36  ;;  %vm2298_vm8 = vmmov %vm2297_vm4 }
 0x15f   : > { %vm529_vm14 = vmor %vm417_vm9, %vm497_vm7 }
 0x160   : > { %vm528_vm6 = vmor %vm416_vm0, %vm496_vm1 }
 0x162   : > { %v577_v12 = vpop.permute.xlu1 %576 }
 0x163   : > { %vm609_vm10 = vcmp.eq.s32.totalorder %v1899_v47, %v577_v12  ;;  %vm608_vm11 = vcmp.eq.s32.totalorder %v1892_v44, %v577_v12  ;;  %v822_v44 = vsub.s32 0, %v2175_v43  ;;  %v1036_v47 = vsub.s32 1, %v2175_v43 }
 0x164   : > { %vm641_vm5 = vmor %vm529_vm14, %vm609_vm10 }
 0x165   : > { %v1362_v39 = vsel %vm641_vm5, 1.0, %v1532_v29  ;;  %vm640_vm2 = vmor %vm528_vm6, %vm608_vm11  ;;  %v1070_v29 = vld [vmem:[%s2267_s2 + $0x88] sm:$0xff]  ;;  %v2184_v46 = vrot.slane %v2181_v45, %v822_v44  ;;  %v2189_v13 = vrot.slane %v2181_v45, %v1036_v47 }
 0x166   : > { %1393 = vmatprep.mubr.msk.f32.mxu0 %vm2298_vm8, %v1362_v39  ;;  %1459 = vmatprep.subr.mxu1 %v1070_v29 }
 0x167   : > { %1394 = vmatmul.mubr.msk.f32.gmra.mxu0 %vm640_vm2, %v1534_v52  ;;  %1460 = vmatpush3.msra.mxu1 %v1070_v29  ;;  %v824_v49 = vmul.f32 %v2184_v46, %v743_v48  ;;  %v748_v53 = vpop.permute.xlu1 %747  ;;  %v826_v61 = vmul.f32 %v2184_v46, %v753_v57  ;;  %v828_v16 = vmul.f32 %v2184_v46, %v763_v5 }
 0x168   : > { %v825_v55 = vmul.f32 %v2184_v46, %v748_v53  ;;  %v830_v26 = vmul.f32 %v2184_v46, %v773_v24  ;;  %v832_v40 = vmul.f32 %v2184_v46, %v783_v11 }
 0x16b   : > { %v758_v60 = vpop.permute.xlu1 %757 }
 0x16c   : > { %v827_v3 = vmul.f32 %v2184_v46, %v758_v60 }
 0x16f   : > { %v768_v0 = vpop.permute.xlu1 %767 }
 0x170   : > { %v829_v18 = vmul.f32 %v2184_v46, %v768_v0 }
 0x173   : > { %v778_v31 = vpop.permute.xlu1 %777 }
 0x174   : > { %v831_v34 = vmul.f32 %v2184_v46, %v778_v31 }
 0x177   : > { %v788_v29 = vpop.permute.xlu1 %787 }
 0x178   : > { %v833_v48 = vmul.f32 %v2184_v46, %v788_v29 }
 0x1df   : > { %v955_v41 = vpop.f32.mrf.mxu0 }
 0x1e0   : > { %v956_v50 = vadd.f32 %v955_v41, %v824_v49 }
 0x1e1   : > { %v957_v51 = vpop.f32.mrf.mxu0 }
 0x1e2   : > { %v1038_v52 = vadd.f32 %v2189_v13, %v956_v50 }
 0x1e4   : > { %v1054_v54 = vmax.f32 %v1038_v52, 0.0 }
 0x1e5   : > { %v960_v56 = vpop.f32.mrf.mxu0 }
 0x1e6   : > { %1461 = vmatprep.mubr.f32.mxu1 %v1054_v54  ;;  %v961_v58 = vadd.f32 %v960_v56, %v825_v55  ;;  %v793_v54 = vpop.permute.xlu0 %792 }
 0x1e7   : > { %v962_v59 = vpop.f32.mrf.mxu0  ;;  %v834_v56 = vmul.f32 %v2184_v46, %v793_v54 }
 0x1e8   : > { %v1039_v62 = vadd.f32 %v2189_v13, %v961_v58 }
 0x1e9   : > { %v965_v63 = vpop.f32.mrf.mxu0 }
 0x1ea   : > { %v1055_v14 = vmax.f32 %v1039_v62, 0.0  ;;  %v966_v1 = vadd.f32 %v965_v63, %v826_v61  ;;  %v798_v61 = vpop.permute.xlu1 %797 }
 0x1eb   : > { %v967_v2 = vpop.f32.mrf.mxu0  ;;  %v835_v63 = vmul.f32 %v2184_v46, %v798_v61 }
 0x1ec   : > { %v1040_v15 = vadd.f32 %v2189_v13, %v966_v1  ;;  %1462 = vmatmul.mubr.f32.vlgmr.msra.gmra.mxu1 %v1055_v14 }
 0x1ed   : > { %v970_v4 = vpop.f32.mrf.mxu0 }
 0x1ee   : > { %v1056_v6 = vmax.f32 %v1040_v15, 0.0  ;;  %v971_v7 = vadd.f32 %v970_v4, %v827_v3  ;;  %v803_v15 = vpop.permute.xlu0 %802 }
 0x1ef   : > { %v972_v8 = vpop.f32.mrf.mxu0  ;;  %v836_v5 = vmul.f32 %v2184_v46, %v803_v15 }
 0x1f0   : > { %v1041_v9 = vadd.f32 %v2189_v13, %v971_v7  ;;  %1464 = vmatprep.mubr.f32.mxu1 %v1056_v6 }
 0x1f1   : > { %v975_v10 = vpop.f32.mrf.mxu0 }
 0x1f2   : > { %v1057_v17 = vmax.f32 %v1041_v9, 0.0  ;;  %v976_v27 = vadd.f32 %v975_v10, %v828_v16  ;;  %v808_v16 = vpop.permute.xlu1 %807 }
 0x1f3   : > { %v977_v19 = vpop.f32.mrf.mxu0  ;;  %v837_v10 = vmul.f32 %v2184_v46, %v808_v16 }
 0x1f4   : > { %v1042_v20 = vadd.f32 %v2189_v13, %v976_v27  ;;  %1465 = vmatmul.mubr.f32.gmra.mxu1 %v1057_v17  ;;  %v813_v27 = vpop.permute.xlu0 %812 }
 0x1f6   : > { %v1058_v22 = vmax.f32 %v1042_v20, 0.0  ;;  %v818_v31 = vpop.permute.xlu1 %817 }
 0x1f8   : > { %v980_v21 = vpop.f32.mrf.mxu0  ;;  %1467 = vmatprep.mubr.f32.mxu1 %v1058_v22  ;;  %v838_v22 = vmul.f32 %v2184_v46, %v813_v27 }
 0x1f9   : > { %v981_v23 = vadd.f32 %v980_v21, %v829_v18 }
 0x1fa   : > { %v982_v25 = vpop.f32.mrf.mxu0 }
 0x1fb   : > { %v1043_v28 = vadd.f32 %v2189_v13, %v981_v23 }
 0x1fc   : > { %v985_v30 = vpop.f32.mrf.mxu0 }
 0x1fd   : > { %v1059_v32 = vmax.f32 %v1043_v28, 0.0  ;;  %v986_v33 = vadd.f32 %v985_v30, %v830_v26 }
 0x1fe   : > { %v987_v35 = vpop.f32.mrf.mxu0 }
 0x1ff   : > { %v1044_v36 = vadd.f32 %v2189_v13, %v986_v33  ;;  %1468 = vmatmul.mubr.f32.gmra.mxu1 %v1059_v32  ;;  %v839_v33 = vmul.f32 %v2184_v46, %v818_v31 }
 0x200   : > { %v990_v37 = vpop.f32.mrf.mxu0 }
 0x201   : > { %v1060_v38 = vmax.f32 %v1044_v36, 0.0  ;;  %v991_v12 = vadd.f32 %v990_v37, %v831_v34 }
 0x202   : > { %v992_v39 = vpop.f32.mrf.mxu0 }
 0x203   : > { %v1045_v42 = vadd.f32 %v2189_v13, %v991_v12  ;;  %1470 = vmatprep.mubr.f32.mxu1 %v1060_v38  ;;  %v1088_v12 = vsub.s32 2, %v2175_v43 }
 0x204   : > { %v995_v44 = vpop.f32.mrf.mxu0 }
 0x205   : > { %v1061_v47 = vmax.f32 %v1045_v42, 0.0  ;;  %v996_v49 = vadd.f32 %v995_v44, %v832_v40  ;;  %v1089_v11 = vrot.slane %v2181_v45, %v1088_v12 }
 0x206   : > { %v997_v41 = vpop.f32.mrf.mxu0 }
 0x207   : > { %v1046_v50 = vadd.f32 %v2189_v13, %v996_v49  ;;  %1471 = vmatmul.mubr.f32.gmra.mxu1 %v1061_v47 }
 0x209   : > { %v1000_v51 = vpop.f32.mrf.mxu0  ;;  %v1062_v52 = vmax.f32 %v1046_v50, 0.0 }
 0x20a   : > { %v1001_v53 = vadd.f32 %v1000_v51, %v833_v48 }
 0x20b   : > { %v1002_v55 = vpop.f32.mrf.mxu0  ;;  %1473 = vmatprep.mubr.f32.mxu1 %v1062_v52 }
 0x20c   : > { %v1047_v57 = vadd.f32 %v2189_v13, %v1001_v53 }
 0x20e   : > { %v1005_v58 = vpop.f32.mrf.mxu0  ;;  %v1063_v59 = vmax.f32 %v1047_v57, 0.0 }
 0x20f   : > { %v1006_v60 = vadd.f32 %v1005_v58, %v834_v56 }
 0x210   : > { %v1007_v62 = vpop.f32.mrf.mxu0  ;;  %1474 = vmatmul.mubr.f32.gmra.mxu1 %v1063_v59 }
 0x211   : > { %v1048_v14 = vadd.f32 %v2189_v13, %v1006_v60 }
 0x212   : > { %v1010_v1 = vpop.f32.mrf.mxu0 }
 0x213   : > { %v1064_v3 = vmax.f32 %v1048_v14, 0.0  ;;  %v1011_v2 = vadd.f32 %v1010_v1, %v835_v63 }
 0x214   : > { %v1012_v4 = vpop.f32.mrf.mxu0 }
 0x215   : > { %v1049_v6 = vadd.f32 %v2189_v13, %v1011_v2  ;;  %1476 = vmatprep.mubr.f32.mxu1 %v1064_v3 }
 0x216   : > { %v1015_v7 = vpop.f32.mrf.mxu0 }
 0x217   : > { %v1065_v8 = vmax.f32 %v1049_v6, 0.0  ;;  %v1016_v0 = vadd.f32 %v1015_v7, %v836_v5 }
 0x218   : > { %v1017_v9 = vpop.f32.mrf.mxu0 }
 0x219   : > { %v1050_v17 = vadd.f32 %v2189_v13, %v1016_v0  ;;  %1477 = vmatmul.mubr.f32.gmra.mxu1 %v1065_v8 }
 0x21a   : > { %v1020_v18 = vpop.f32.mrf.mxu0 }
 0x21b   : > { %v1066_v19 = vmax.f32 %v1050_v17, 0.0  ;;  %v1021_v20 = vadd.f32 %v1020_v18, %v837_v10 }
 0x21c   : > { %v1022_v21 = vpop.f32.mrf.mxu0 }
 0x21d   : > { %v1051_v23 = vadd.f32 %v2189_v13, %v1021_v20  ;;  %1479 = vmatprep.mubr.f32.mxu1 %v1066_v19 }
 0x21e   : > { %v1025_v24 = vpop.f32.mrf.mxu0 }
 0x21f   : > { %v1067_v25 = vmax.f32 %v1051_v23, 0.0  ;;  %v1026_v26 = vadd.f32 %v1025_v24, %v838_v22 }
 0x220   : > { %v1027_v28 = vpop.f32.mrf.mxu0 }
 0x221   : > { %1480 = vmatmul.mubr.f32.gmra.mxu1 %v1067_v25  ;;  %v1052_v30 = vadd.f32 %v2189_v13, %v1026_v26 }
 0x223   : > { %v1068_v32 = vmax.f32 %v1052_v30, 0.0 }
 0x225   : > { %1482 = vmatprep.mubr.f32.mxu1 %v1068_v32 }
 0x227   : > { %v1030_v34 = vpop.f32.mrf.mxu0 }
 0x228   : > { %v1031_v35 = vadd.f32 %v1030_v34, %v839_v33 }
 0x229   : > { %v1032_v36 = vpop.f32.mrf.mxu0 }
 0x22a   : > { %v1053_v37 = vadd.f32 %v2189_v13, %v1031_v35 }
 0x22c   : > { %v1069_v38 = vmax.f32 %v1053_v37, 0.0 }
 0x22e   : > { %1483 = vmatmul.mubr.f32.gmra.mxu1 %v1069_v38 }
 0x2ac   : > { %v1463_v46 = vpop.f32.mrf.mxu1 }
 0x2ad   : > { %v1162_v39 = vadd.f32 %v1463_v46, %v1089_v11 }
 0x2ae   : > { %v1156_v13 = vpop.f32.mrf.mxu1 }
 0x2af   : > { %1237 = vst.msk [vmem:[%s2228_s24 + $0x8] sm:$0xff] %vm1235_vm15, %v1162_v39  ;;  %v1157_v43 = vadd.f32 %v1156_v13, %v1089_v11 }
 0x2b1   : > { %1236 = vst.msk [vmem:[%s2228_s24] sm:$0xff] %vm1235_vm15, %v1157_v43 }
 0x2b4   : > { %v1466_v45 = vpop.f32.mrf.mxu1 }
 0x2b5   : > { %v1172_v40 = vadd.f32 %v1466_v45, %v1089_v11 }
 0x2b6   : > { %v1166_v42 = vpop.f32.mrf.mxu1 }
 0x2b7   : > { %1239 = vst.msk [vmem:[%s2228_s24 + $0x18] sm:$0xff] %vm1235_vm15, %v1172_v40  ;;  %v1167_v29 = vadd.f32 %v1166_v42, %v1089_v11 }
 0x2b9   : > { %1238 = vst.msk [vmem:[%s2228_s24 + $0x10] sm:$0xff] %vm1235_vm15, %v1167_v29 }
 0x2bf   : > { %v1469_v44 = vpop.f32.mrf.mxu1 }
 0x2c0   : > { %v1182_v47 = vadd.f32 %v1469_v44, %v1089_v11 }
 0x2c1   : > { %v1176_v48 = vpop.f32.mrf.mxu1 }
 0x2c2   : > { %1241 = vst.msk [vmem:[%s2228_s24 + $0x28] sm:$0xff] %vm1235_vm15, %v1182_v47  ;;  %v1177_v49 = vadd.f32 %v1176_v48, %v1089_v11 }
 0x2c4   : > { %1240 = vst.msk [vmem:[%s2228_s24 + $0x20] sm:$0xff] %vm1235_vm15, %v1177_v49 }
 0x2c7   : > { %v1472_v41 = vpop.f32.mrf.mxu1 }
 0x2c8   : > { %v1192_v50 = vadd.f32 %v1472_v41, %v1089_v11 }
 0x2c9   : > { %v1186_v51 = vpop.f32.mrf.mxu1 }
 0x2ca   : > { %1243 = vst.msk [vmem:[%s2228_s24 + $0x38] sm:$0xff] %vm1235_vm15, %v1192_v50  ;;  %v1187_v52 = vadd.f32 %v1186_v51, %v1089_v11 }
 0x2cc   : > { %1242 = vst.msk [vmem:[%s2228_s24 + $0x30] sm:$0xff] %vm1235_vm15, %v1187_v52 }
 0x2d0   : > { %v1475_v53 = vpop.f32.mrf.mxu1 }
 0x2d1   : > { %v1202_v54 = vadd.f32 %v1475_v53, %v1089_v11 }
 0x2d2   : > { %v1196_v55 = vpop.f32.mrf.mxu1 }
 0x2d3   : > { %1245 = vst.msk [vmem:[%s2228_s24 + $0x48] sm:$0xff] %vm1235_vm15, %v1202_v54  ;;  %v1197_v56 = vadd.f32 %v1196_v55, %v1089_v11 }
 0x2d5   : > { %1244 = vst.msk [vmem:[%s2228_s24 + $0x40] sm:$0xff] %vm1235_vm15, %v1197_v56 }
 0x2d9   : > { %v1478_v57 = vpop.f32.mrf.mxu1 }
 0x2da   : > { %v1212_v58 = vadd.f32 %v1478_v57, %v1089_v11 }
 0x2db   : > { %v1206_v59 = vpop.f32.mrf.mxu1 }
 0x2dc   : > { %1247 = vst.msk [vmem:[%s2228_s24 + $0x58] sm:$0xff] %vm1235_vm15, %v1212_v58  ;;  %v1207_v60 = vadd.f32 %v1206_v59, %v1089_v11 }
 0x2de   : > { %1246 = vst.msk [vmem:[%s2228_s24 + $0x50] sm:$0xff] %vm1235_vm15, %v1207_v60 }
 0x2e1   : > { %v1481_v61 = vpop.f32.mrf.mxu1 }
 0x2e2   : > { %v1222_v62 = vadd.f32 %v1481_v61, %v1089_v11 }
 0x2e3   : > { %v1216_v63 = vpop.f32.mrf.mxu1 }
 0x2e4   : > { %1249 = vst.msk [vmem:[%s2228_s24 + $0x68] sm:$0xff] %vm1235_vm15, %v1222_v62  ;;  %v1217_v14 = vadd.f32 %v1216_v63, %v1089_v11 }
 0x2e6   : > { %1248 = vst.msk [vmem:[%s2228_s24 + $0x60] sm:$0xff] %vm1235_vm15, %v1217_v14 }
 0x2ee   : > { %v1484_v1 = vpop.f32.mrf.mxu1 }
 0x2ef   : > { %v1232_v3 = vadd.f32 %v1484_v1, %v1089_v11 }
 0x2f0   : > { %v1226_v2 = vpop.f32.mrf.mxu1 }
 0x2f1   : > { %1251 = vst.msk [vmem:[%s2228_s24 + $0x78] sm:$0xff] %vm1235_vm15, %v1232_v3  ;;  %v1227_v15 = vadd.f32 %v1226_v2, %v1089_v11 }
 0x2f3   : > { %1250 = vst.msk [vmem:[%s2228_s24 + $0x70] sm:$0xff] %vm1235_vm15, %v1227_v15 }
 0x2f4 PF: > { %s14_s15 = sadd.s32 1, %s1527_s15  }
 0x2f5   : > { %p11_p4 = scmp.ge.s32.totalorder %s14_s15, 4  }
 0x2f7   :  { %13 = sbr.rel (!%p11_p4) target bundleno = 1 (0x1), region = 69 }

</bundles_post_ra>
